<compile_context>
chip_gen: v5e
topology: v5e:2x2
jax: 0.10.0
libtpu: 0.0.40
codegen_flags: <defaults>
</compile_context>

<pallas_src>
import math

import jax
import jax.numpy as jnp
from jax.experimental import pallas as pl
from jax.experimental.pallas import tpu as pltpu


def _build_position_encoding(max_seq_len: int, d_model: int,
                             dtype=jnp.float32) -> jnp.ndarray:
    """Sinusoidal PE table, identical to the PyTorch __init__ (odd d_model safe)."""
    position = jnp.arange(max_seq_len, dtype=jnp.float32)[:, None]            # (L, 1)
    div_term = jnp.exp(
        jnp.arange(0, d_model, 2, dtype=jnp.float32) * (-math.log(10000.0) / d_model)
    )                                                                           # (ceil(D/2),)
    angles = position * div_term                                                # (L, ceil(D/2))
    pe = jnp.zeros((max_seq_len, d_model), dtype=jnp.float32)
    pe = pe.at[:, 0::2].set(jnp.sin(angles))
    pe = pe.at[:, 1::2].set(jnp.cos(angles)[:, : d_model // 2])  # handles odd d_model
    return pe.astype(dtype)


def _add_pe_kernel(x_ref, pe_ref, o_ref):
    # x_ref / pe_ref / o_ref are (TR, L) tiles — pure 2-D VPU elementwise add.
    o_ref[...] = x_ref[...] + pe_ref[...]


def _vmem_capacity_bytes() -> int:
    """Per-core physical VMEM (v5e/v6e: 128 MiB, v7x: 64 MiB); conservative fallback."""
    try:
        info = pltpu.get_tpu_info()
        for name in ("vmem_capacity_bytes", "vmem_size_bytes", "vmem_bytes"):
            v = getattr(info, name, None)
            if v:
                return int(v)
    except Exception:
        pass
    return 64 * 1024 * 1024


def _fold_lane(n: int, max_lane: int = 2048) -> int:
    """Largest power-of-two multiple of 128 (<= max_lane) dividing n (n % 128 == 0)."""
    lane = 128
    while lane * 2 <= max_lane and n % (lane * 2) == 0:
        lane *= 2
    return lane


def _choose_row_tile(rows: int, lane: int, itemsize: int,
                     target_bytes: int, sublane: int) -> int:
    """Largest sublane-aligned row tile with block bytes ~<= target_bytes."""
    if rows * lane * itemsize <= target_bytes:
        return rows                         # whole slab fits in one block
    max_rows = max(sublane, (target_bytes // (lane * itemsize)) // sublane * sublane)
    max_rows = min(max_rows, rows)
    tr = max_rows
    while tr > sublane:                     # prefer an exact divisor (no ragged edge)
        if rows % tr == 0:
            return tr
        tr -= sublane
    return max_rows                         # cdiv grid handles the ragged edge


def positional_encoding_forward(x: jnp.ndarray, pe_table: jnp.ndarray, *,
                                use_pallas: bool | None = None,
                                block_target_bytes: int | None = None,
                                alias_input: bool = False) -> jnp.ndarray:
    """x: (B, S, D); pe_table: (max_seq_len, D). Returns x + pe_table[:S]."""
    B, S, D = x.shape
    max_seq_len, d_pe = pe_table.shape
    if S > max_seq_len:
        raise ValueError(f"seq_len {S} exceeds max_seq_len {max_seq_len}")
    if D != d_pe:
        raise ValueError(f"d_model mismatch: x has {D}, pe_table has {d_pe}")

    if use_pallas is None:                  # tiny problems: plain fused XLA add is fine
        use_pallas = x.size * x.dtype.itemsize >= (1 << 20)
    if not use_pallas:
        return x + pe_table[None, :S, :].astype(x.dtype)

    itemsize = x.dtype.itemsize
    sublane = 8 * max(1, 4 // itemsize)     # 8 for f32, 16 for bf16, 32 for int8

    # Generation-aware VMEM budget: leave headroom under physical per-core VMEM,
    # and size blocks so 3 streams x 2 buffers (~6x block) fit comfortably.
    vmem_cap = _vmem_capacity_bytes()
    vmem_limit = int(0.70 * vmem_cap)
    vmem_limit = max(min(vmem_limit, 96 * 1024 * 1024), min(32 * 1024 * 1024, vmem_cap))
    if block_target_bytes is None:
        block_target_bytes = 8 * 1024 * 1024
    block_target = min(block_target_bytes, max(vmem_limit // 6, 256 * 1024))

    # ---- Layout selection (always lane-dense when arithmetically possible) ----
    if D % 128 == 0:
        mode = "natural"
    elif (S * D) % 128 == 0:
        mode = "fold_seq"
    elif (B * S * D) % 128 == 0:
        mode = "fold_batch"
    else:
        mode = "natural"                    # masked-store fallback (correct, slower)

    if mode == "natural":
        L, R, B_eff = D, S, B
        x3 = x
        if pe_table.dtype == x.dtype and S % sublane == 0:
            # Zero wrapper ops: pass the full buffer; index_map only visits rows < S.
            pe2 = pe_table
        else:
            pe2 = pe_table[:S, :].astype(x.dtype)
        pe_read_bytes = S * D * itemsize
    elif mode == "fold_seq":
        L = _fold_lane(S * D)
        R, B_eff = (S * D) // L, B
        x3 = x.reshape(B, R, L)
        pe2 = pe_table[:S, :].astype(x.dtype).reshape(R, L)
        pe_read_bytes = S * D * itemsize
    else:  # fold_batch: small odd d_model — pay (B-1)*S*D extra PE reads, keep vst dense
        L = _fold_lane(B * S * D)
        R, B_eff = (B * S * D) // L, 1
        x3 = x.reshape(1, R, L)
        pe2 = jnp.broadcast_to(pe_table[None, :S, :].astype(x.dtype),
                               (B, S, D)).reshape(R, L)
        pe_read_bytes = B * S * D * itemsize

    TR = _choose_row_tile(R, L, itemsize, block_target, sublane)
    n_row_tiles = pl.cdiv(R, TR)

    # v7x megacore: make sure a "parallel" axis has extent >= 2 when possible,
    # otherwise one TensorCore sits idle for B == 1 slabs that fit one block.
    if n_row_tiles * B_eff < 2 and R > sublane:
        half = (R + 1) // 2
        TR = min(R, ((half + sublane - 1) // sublane) * sublane)
        n_row_tiles = pl.cdiv(R, TR)

    out3 = pl.pallas_call(
        _add_pe_kernel,
        out_shape=jax.ShapeDtypeStruct((B_eff, R, L), x.dtype),
        grid_spec=pltpu.PrefetchScalarGridSpec(
            num_scalar_prefetch=0,
            # Batch innermost: the PE tile's block index is unchanged across the
            # inner axis, so it is not re-DMA'd per batch element.
            grid=(n_row_tiles, B_eff),
            in_specs=[
                pl.BlockSpec((pl.Squeezed(), TR, L), lambda r, b: (b, r, 0)),
                pl.BlockSpec((TR, L), lambda r, b: (r, 0)),
            ],
            out_specs=pl.BlockSpec((pl.Squeezed(), TR, L), lambda r, b: (b, r, 0)),
        ),
        compiler_params=pltpu.CompilerParams(
            dimension_semantics=("parallel", "parallel"),
            vmem_limit_bytes=vmem_limit,
        ),
        cost_estimate=pl.CostEstimate(
            flops=B * S * D,
            transcendentals=0,
            bytes_accessed=2 * B * S * D * itemsize + pe_read_bytes,
        ),
        # Overwrite x in place when the caller donates it at the jit boundary.
        input_output_aliases=({0: 0} if alias_input else {}),
    )(x3, pe2)

    return out3.reshape(B, S, D)


if __name__ == "__main__":
    # 1) Shapes consistent with the module: batch=2, seq=8, d_model=32 (fold_seq path).
    B, S, D = 2, 8, 32
    MAX_SEQ_LEN = 16
    key = jax.random.PRNGKey(0)
    x = jax.random.normal(key, (B, S, D), dtype=jnp.float32)
    pe_table = _build_position_encoding(MAX_SEQ_LEN, D)           # built once, f32 like PyTorch
    out = jax.block_until_ready(positional_encoding_forward(x, pe_table, use_pallas=True))
    ref = x + pe_table[None, :S, :]
    assert out.shape == (B, S, D)
    assert jnp.allclose(out, ref, atol=1e-6, rtol=1e-6), "mismatch vs reference (fold_seq path)"

    # 2) d_model multiple of 128, S < max_seq_len: full-table zero-copy natural path.
    xa = jax.random.normal(jax.random.PRNGKey(1), (2, 16, 128), dtype=jnp.float32)
    pea = _build_position_encoding(32, 128)
    oa = jax.block_until_ready(positional_encoding_forward(xa, pea, use_pallas=True))
    assert jnp.allclose(oa, xa + pea[None, :16, :], atol=1e-6, rtol=1e-6), "mismatch (natural path)"

    # 3) Multi-tile rows with a ragged edge block (tiny block target, S not sublane-aligned).
    xb = jax.random.normal(jax.random.PRNGKey(2), (2, 20, 128), dtype=jnp.float32)
    ob = jax.block_until_ready(
        positional_encoding_forward(xb, pea, use_pallas=True, block_target_bytes=8192))
    assert jnp.allclose(ob, xb + pea[None, :20, :], atol=1e-6, rtol=1e-6), "mismatch (tiled path)"

    # 4) Small odd d_model: fold batch into rows to keep stores lane-dense.
    xc = jax.random.normal(jax.random.PRNGKey(3), (4, 4, 24), dtype=jnp.float32)
    pec = _build_position_encoding(8, 24)
    oc = jax.block_until_ready(positional_encoding_forward(xc, pec, use_pallas=True))
    assert jnp.allclose(oc, xc + pec[None, :4, :], atol=1e-6, rtol=1e-6), "mismatch (fold_batch path)"

    # 5) Aliased output (in-place when donated at a jit boundary); bf16 table in x.dtype.
    xd = jax.random.normal(jax.random.PRNGKey(4), (2, 32, 128), dtype=jnp.bfloat16)
    ped = _build_position_encoding(32, 128, dtype=jnp.bfloat16)
    od = jax.block_until_ready(
        positional_encoding_forward(xd, ped, use_pallas=True, alias_input=True))
    assert jnp.allclose(od.astype(jnp.float32),
                        (xd + ped[None, :32, :]).astype(jnp.float32),
                        atol=1e-2, rtol=1e-2), "mismatch (aliased bf16 path)"

    print("KERNEL_OK")
</pallas_src>

<mosaic_0001>
module attributes {stable_mosaic.version = 11 : i64} {
  func.func @_add_pe_kernel(%arg0: i32, %arg1: i32, %arg2: memref<1x1x256xf32, #tpu.memory_space<vmem>>, %arg3: memref<1x256xf32, #tpu.memory_space<vmem>>, %arg4: memref<1x1x256xf32, #tpu.memory_space<vmem>>) attributes {dimension_semantics = [#tpu.dimension_semantics<parallel>, #tpu.dimension_semantics<parallel>], iteration_bounds = array<i64: 1, 2>, scalar_prefetch = 0 : i64, scratch_operands = 0 : i64, tpu.core_type = #tpu.core_type<tc>, window_params = [{transform_indices = @transform_0, window_bounds = array<i64: 1, 1, 256>}, {transform_indices = @transform_1, window_bounds = array<i64: 1, 256>}, {transform_indices = @transform_2, window_bounds = array<i64: 1, 1, 256>}]} {
    %c0 = arith.constant 0 : index
    %c0_0 = arith.constant 0 : index
    %c0_1 = arith.constant 0 : index
    %0 = vector.load %arg2[%c0, %c0_0, %c0_1] : memref<1x1x256xf32, #tpu.memory_space<vmem>>, vector<1x1x256xf32>
    %1 = vector.shape_cast %0 : vector<1x1x256xf32> to vector<1x256xf32>
    %c0_2 = arith.constant 0 : index
    %c0_3 = arith.constant 0 : index
    %2 = vector.load %arg3[%c0_2, %c0_3] : memref<1x256xf32, #tpu.memory_space<vmem>>, vector<1x256xf32>
    %3 = arith.addf %1, %2 : vector<1x256xf32>
    %c0_4 = arith.constant 0 : index
    %c0_5 = arith.constant 0 : index
    %c0_6 = arith.constant 0 : index
    %4 = vector.load %arg4[%c0_4, %c0_5, %c0_6] : memref<1x1x256xf32, #tpu.memory_space<vmem>>, vector<1x1x256xf32>
    %5 = vector.shape_cast %4 : vector<1x1x256xf32> to vector<1x256xf32>
    %6 = vector.shape_cast %3 : vector<1x256xf32> to vector<1x1x256xf32>
    tpu.vector_store %arg4[%c0_4, %c0_5, %c0_6], %6 {strides = array<i32>} : memref<1x1x256xf32, #tpu.memory_space<vmem>>, vector<1x1x256xf32>,
    return
  }
  func.func @transform_0(%arg0: i32, %arg1: i32) -> (i32, i32, i32) {
    %c0_i32 = arith.constant 0 : i32
    %c0_i32_0 = arith.constant 0 : i32
    return %arg1, %arg0, %c0_i32 : i32, i32, i32
  }
  func.func @transform_1(%arg0: i32, %arg1: i32) -> (i32, i32) {
    %c0_i32 = arith.constant 0 : i32
    %c0_i32_0 = arith.constant 0 : i32
    return %arg0, %c0_i32 : i32, i32
  }
  func.func @transform_2(%arg0: i32, %arg1: i32) -> (i32, i32, i32) {
    %c0_i32 = arith.constant 0 : i32
    %c0_i32_0 = arith.constant 0 : i32
    return %arg1, %arg0, %c0_i32 : i32, i32, i32
  }
}

</mosaic_0001>

<bundles_post_ra>
// kernel: tpu_custom_call.1
= control target key start
LH: loop header
LB: loop body
LE: loop exit
PB: predicated region body
PF: predicated region fallthrough
CT: control target
= control target key end

     0   :  { %7 = vsyncpa [#allocation3], 0  ;;  %s722_s0 = inlined_call_operand.hbm [shape: f32[2,1,256], index: 0, kind: input, shape index: {}]   ;;  %s723_s1 = inlined_call_operand.hbm [shape: f32[1,256], index: 1, kind: input, shape index: {}]   ;;  %s724_s2 = inlined_call_operand.hbm [shape: f32[2,1,256], index: 2, kind: output, shape index: {}]  }
   0x1   :  { %9 = vsyncpa [#allocation3 + $0x1], 0 }
   0x2   :  { %10 = vsyncpa [#allocation6], 0 }
   0x3   :  { %11 = vsyncpa [#allocation4], 0 }
   0x4   :  { %13 = vsyncpa [#allocation4 + $0x1], 0  ;;  %s573_s9 = smov 0   ;;  %s575_s10 = smov 0  }
   0x5   :  { %s577_s11 = smov 0   ;;  %s579_s12 = smov 0  }
   0x6   :  { %s581_s13 = smov 0   ;;  %s583_s14 = smov 0  }
   0x7 LB: > { %s321_s15 = sadd.s32 4294967295, %s555_s14   ;;  %s322_s16 = sadd.s32 4294967294, %s555_s14   ;;  %s555_s14 = sphi %s583_s14, %s19_s14   ;;  %s551_s13 = sphi %s581_s13, %s736_s13   ;;  %s547_s12 = sphi %s579_s12, %s735_s12   ;;  %s543_s11 = sphi %s577_s11, %s734_s11   ;;  %s539_s10 = sphi %s575_s10, %s733_s10   ;;  %s535_s9 = sphi %s573_s9, %s732_s9  }
   0x8   : > { %p53_p0 = scmp.ne.s32.totalorder %s539_s10, %s535_s9  ;;  %p607_p1 = scmp.eq.s32.totalorder %s321_s15, 0 }
   0x9   : > { %p611_p2 = scmp.eq.s32.totalorder %s321_s15, 1  ;;  %p111_p3 = scmp.eq.s32.totalorder %s322_s16, 1 }
   0xa   : > { %p617_p4 = por %p607_p1, %p53_p0  ;;  %p323_p5 = scmp.ge.s32.totalorder %s555_s14, 1 }
   0xb   : > { %p622_p6 = por %p111_p3, %p53_p0  ;;  %p118_p7 = scmp.lt.s32.totalorder %s555_s14, 3 }
   0xc   : > { %s132_s23 = sshll.u32 %s723_s1, 4  ;;  %p325_p9 = scmp.ge.s32.totalorder %s555_s14, 2  ;;  %s133_s23 = int_to_ptr.hbm [resolvable:$true] %s132_s23 }
   0xd   : > { %p630_p8 = pnand %p323_p5, %p118_p7  ;;  %s557_s25 = smov [#allocation5]  }
   0xe   : > { %s134_s26 = sshll.u32 %s557_s25, 4  ;;  %s28_s27 = sadd.s32 1, %s551_s13  ;;  %s135_s26 = int_to_ptr.vmem [resolvable:$true] %s134_s26 }
   0xf   : > { %p344_p10 = pneg %p630_p8  ;;  %p29_p12 = scmp.ge.s32.totalorder %s28_s27, 2 }
  0x10   : > { %s40_s28 = sadd.s32 1, %s543_s11  ;;  %p47_p13 = scmp.ne.s32.totalorder %s543_s11, %s539_s10 }
  0x11   : > { %p345_p11 = pnand %p344_p10, %p607_p1  ;;  %p48_p0 = scmp.eq.s32.totalorder %s555_s14, 0 }
  0x12   : > { %s738_s27 = smov (%p29_p12, %s28_s27), 0  ;;  %p652_p5 = por %p611_p2, %p47_p13 }
  0x13   : > { %347 = dma.hbm_to_vmem [thread:$0]  (!%p345_p11), %s133_s23, 32, %s135_s26, [#allocation6]  }
  0x14   : > { %p646_p3 = por %p48_p0, %p47_p13  ;;  %s35_s3 = ssub.s32 %s551_s13, %s738_s27 }
  0x15   : > { %p357_p7 = scmp.lt.s32.totalorder %s555_s14, 2  ;;  %p38_p10 = scmp.eq.s32.totalorder %s35_s3, 0 }
  0x16   : > { %s145_s4 = sand.u32 1, %s543_s11   ;;  %s327_s7 = sshll.u32 %s551_s13, 1 }
  0x17   : > { %s326_s5 = sshll.u32 %s145_s4, 1  ;;  %s155_s16 = scalar_lea.hbm %s722_s0, %s327_s7 }
  0x18   : > { %s661_s6 = scalar_select %p38_p10, %s543_s11, %s40_s28  }
  0x19   : > { %s149_s21 = scalar_lea.vmem [#allocation2], %s326_s5  ;;  %s157_s18 = sshll.u32 %s155_s16, 4  ;;  %s158_s18 = int_to_ptr.hbm [resolvable:$true] %s157_s18 }
  0x1a   : > { %s159_s22 = sshll.u32 %s149_s21, 4  ;;  %p349_p2 = pnand %p357_p7, %p646_p3  ;;  %s160_s22 = int_to_ptr.vmem [resolvable:$true] %s159_s22 }
  0x1b   : > { %s146_s23 = scalar_lea.sflag [#allocation3], %s145_s4  ;;  %168 = sbr.rel (%p630_p8) target bundleno = 50 (0x32), region = 28 }
  0x1c   : > { %351 = dma.hbm_to_vmem [thread:$0]  (!%p349_p2), %s158_s18, 32, %s160_s22, %s146_s23  }
  0x1d   : > { %s672_s25 = sand.u32 (!%p630_p8), 1, %s539_s10  }
  0x1e   : > { %s329_s26 = sshll.u32 (!%p630_p8), %s672_s25, 1  ;;  %s171_s28 = scalar_lea.sflag (!%p630_p8), [#allocation3], %s672_s25 }
  0x1f   : > { %s174_s3 = scalar_lea.vmem (!%p630_p8), [#allocation2], %s329_s26 }
  0x20   : > { %522 = dma.done.wait (%p617_p4), %s171_s28, 32  }
  0x21   : > { %524 = vsyncadd (%p617_p4), %s171_s28, 4294967264 }
  0x22   : > { %526 = dma.done.wait (%p607_p1), [#allocation6], 32  }
  0x23   : > { %528 = vsyncadd (%p607_p1), [#allocation6], 4294967264  ;;  %s333_s24 = sshll.u32 %s547_s12, 1  ;;  %v204_v0 = vlaneseq  ;;  %s200_s7 = scalar_lea.vmem [#allocation7], %s329_s26  ;;  %v201_v1 = vld [vmem:[%s174_s3] sm:$0x3] }
  0x24   : > { %s222_s5 = scalar_lea.hbm %s724_s2, %s333_s24  ;;  %s224_s8 = sshll.u32 %s200_s7, 4  ;;  %v202_v2 = vld [vmem:[#allocation5] sm:$0x3]  ;;  %s225_s8 = int_to_ptr.vmem [resolvable:$true] %s224_s8 }
  0x25   : > { %s226_s15 = sshll.u32 %s222_s5, 4  ;;  %vm206_vm0 = vcmp.lt.s32.totalorder %v204_v0, 256  ;;  %v203_v3 = vadd.f32 %v202_v2, %v201_v1  ;;  %s210_s17 = scalar_lea.sflag [#allocation4], %s672_s25  ;;  %s227_s15 = int_to_ptr.hbm [resolvable:$true] %s226_s15 }
  0x26   : > { %s483_s19 = sshra.s32 %s227_s15, 4  ;;  %s489_s22 = scalar_lea.hbm %s724_s2, 4  ;;  %s484_s19 = int_to_ptr.hbm [resolvable:$true] %s483_s19 }
  0x27   : > { %208 = vst.msk [vmem:[%s200_s7] sm:$0x3] %vm206_vm0, %v203_v3  ;;  %s485_s12 = scalar_lea.hbm %s484_s19, 2  ;;  %p490_p11 = scmp.lt.s32.totalorder %s484_s19, %s724_s2 }
  0x28   : > { %p486_p1 = scmp.ne.s32.totalorder %s484_s19, %s485_s12  ;;  %p491_p12 = scmp.lt.s32.totalorder %s489_s22, %s485_s12 }
  0x2a   : > { %p487_p4 = pnand %p486_p1, %p652_p5  ;;  %p492_p13 = por %p491_p12, %p490_p11 }
  0x2c   : > { %p488_p8 = pneg %p487_p4 }
  0x2e   : > { %p493_p0 = pnand %p492_p13, %p488_p8 }
  0x30   : > { %496 = shalt.err (!%p493_p0)
}
  0x31   : > { %342 = dma.vmem_to_hbm [thread:$0]  (%p652_p5), %s225_s8, 32, %s227_s15, %s210_s17  }
  0x32 PF: > { %s238_s25 = sand.u32 1, %s535_s9   ;;  %p353_p3 = pnand %p325_p9, %p622_p6 }
  0x33   : > { %s239_s26 = scalar_lea.sflag [#allocation4], %s238_s25 }
  0x34   : > { %p354_p7 = pneg %p353_p3 }
  0x36   : > { %530 = dma.done.wait (%p354_p7), %s239_s26, 32  }
  0x37   : > { %532 = vsyncadd (%p354_p7), %s239_s26, 4294967264  ;;  %s19_s14 = sadd.s32 1, %s555_s14   ;;  %s732_s9 = smov %s539_s10 }
  0x38   : > { %p16_p10 = scmp.ge.s32.totalorder %s19_s14, 4   ;;  %s733_s10 = smov %s543_s11 }
  0x39   : > { %s734_s11 = smov %s661_s6  ;;  %s735_s12 = smov %s551_s13 }
  0x3a   : > { %s736_s13 = smov %s738_s27  ;;  %18 = sbr.rel (!%p16_p10) target bundleno = 7 (0x7), region = 78 }
  0x3f   :  { %245 = vsyncpa [#allocation3], 1 }
  0x40   :  { %247 = vsyncpa [#allocation3 + $0x1], 1 }
  0x41   :  { %248 = vsyncpa [#allocation6], 1 }
  0x42   :  { %249 = vsyncpa [#allocation4], 1 }
  0x43   :  { %251 = vsyncpa [#allocation4 + $0x1], 1 }

</bundles_post_ra>
